<compile_context>
chip_gen: v6e
topology: v6e:2x2x1
jax: 0.10.0
libtpu: 0.0.40
codegen_flags: <defaults>
</compile_context>

<pallas_src>
import functools

import jax
import jax.numpy as jnp
from jax import lax
from jax.experimental import pallas as pl
from jax.experimental.pallas import tpu as pltpu

LANES = 128
SUBLANES = 8
NUM_SHARDS = 2          # leading "parallel" grid axis (both TCs on v7x; no-op elsewhere)
MAX_BLOCK_ROWS = 1024   # (1024,128) f32 tile = 512 KiB -> ~85%+ of HBM roofline per review


def _mse_partial_kernel(a_ref, b_ref, out_ref, *, block_rows, tail_rows):
    """Accumulate sum((a-b)^2) of this shard's row-tiles into a resident (8,128) f32 block."""
    j = pl.program_id(1)

    @pl.when(j == 0)
    def _():
        out_ref[...] = jnp.zeros_like(out_ref)

    d = a_ref[...].astype(jnp.float32) - b_ref[...].astype(jnp.float32)
    sq = d * d

    if tail_rows != block_rows:
        # Only the last tile of each shard overhangs the shard's valid rows; the overhang
        # rows in the VMEM buffer are unspecified, so zero them before accumulating.
        last = pl.num_programs(1) - 1
        limit = jnp.where(j == last, tail_rows, block_rows)
        row_ids = lax.broadcasted_iota(jnp.int32, sq.shape, 0)
        sq = jnp.where(row_ids < limit, sq, 0.0)

    # Fold (block_rows, 128) onto the (8, 128) accumulator with pure cross-vreg VPU adds
    # (no XLU cross-lane reduce in the hot loop).
    out_ref[...] += sq.reshape(block_rows // SUBLANES, SUBLANES, LANES).sum(axis=0)


@functools.partial(jax.jit, static_argnames=("loss_weight",))
def mse_loss(a, b, loss_weight=1.0):
    assert a.shape == b.shape, "mse_loss requires matching shapes"
    n_elems = a.size

    a_flat = a.reshape(-1)
    b_flat = b.reshape(-1)

    chunk = NUM_SHARDS * SUBLANES * LANES  # 2048 elements
    pad = (-n_elems) % chunk
    if pad:
        # Zero padding adds 0 to the squared-diff sum (at most chunk-1 elements).
        # TODO(synk): for very large unaligned inputs, mask this tail in-kernel instead of copying.
        a_flat = jnp.pad(a_flat, (0, pad))
        b_flat = jnp.pad(b_flat, (0, pad))

    total = n_elems + pad
    rows = total // LANES                     # multiple of NUM_SHARDS * SUBLANES
    rows_per_shard = rows // NUM_SHARDS       # multiple of SUBLANES, >= SUBLANES
    block_rows = min(MAX_BLOCK_ROWS, rows_per_shard)      # multiple of 8 (or full dim)
    bps = pl.cdiv(rows_per_shard, block_rows)             # sequential steps per shard
    tail_rows = rows_per_shard - (bps - 1) * block_rows   # valid rows in each shard's last tile

    a3 = a_flat.reshape(NUM_SHARDS, rows_per_shard, LANES)
    b3 = b_flat.reshape(NUM_SHARDS, rows_per_shard, LANES)

    kernel = functools.partial(
        _mse_partial_kernel, block_rows=block_rows, tail_rows=tail_rows
    )

    in_bytes = 2 * total * a.dtype.itemsize
    out_bytes = NUM_SHARDS * SUBLANES * LANES * 4

    partials = pl.pallas_call(
        kernel,
        out_shape=jax.ShapeDtypeStruct((NUM_SHARDS * SUBLANES, LANES), jnp.float32),
        grid_spec=pltpu.PrefetchScalarGridSpec(
            num_scalar_prefetch=0,
            grid=(NUM_SHARDS, bps),
            in_specs=[
                pl.BlockSpec((None, block_rows, LANES), lambda s, j: (s, j, 0)),
                pl.BlockSpec((None, block_rows, LANES), lambda s, j: (s, j, 0)),
            ],
            out_specs=pl.BlockSpec((SUBLANES, LANES), lambda s, j: (s, 0)),
        ),
        compiler_params=pltpu.CompilerParams(
            dimension_semantics=("parallel", "arbitrary"),
        ),
        cost_estimate=pl.CostEstimate(
            flops=3 * total, transcendentals=0, bytes_accessed=in_bytes + out_bytes
        ),
    )(a3, b3)

    mean = jnp.sum(partials) / jnp.float32(n_elems)
    return jnp.float32(loss_weight) * mean


if __name__ == "__main__":
    key = jax.random.PRNGKey(0)
    ka, kb = jax.random.split(key)
    a = jax.random.normal(ka, (2, 4, 16, 16), dtype=jnp.float32)
    b = jax.random.normal(kb, (2, 4, 16, 16), dtype=jnp.float32)

    loss = mse_loss(a, b, loss_weight=1.0)
    jax.block_until_ready(loss)

    ref = jnp.mean((a - b) ** 2)
    assert jnp.allclose(loss, ref, rtol=1e-5, atol=1e-6), (loss, ref)

    # Exercise the multi-tile + ragged-tail path as well (still a small input).
    ka2, kb2 = jax.random.split(jax.random.PRNGKey(1))
    a2 = jax.random.normal(ka2, (2, 3, 128, 400), dtype=jnp.float32)
    b2 = jax.random.normal(kb2, (2, 3, 128, 400), dtype=jnp.float32)
    loss2 = mse_loss(a2, b2, loss_weight=0.5)
    jax.block_until_ready(loss2)
    ref2 = 0.5 * jnp.mean((a2 - b2) ** 2)
    assert jnp.allclose(loss2, ref2, rtol=1e-5, atol=1e-6), (loss2, ref2)

    print("KERNEL_OK")
</pallas_src>

<mosaic_0001>
module attributes {stable_mosaic.version = 11 : i64} {
  func.func @_mse_partial_kernel(%arg0: i32, %arg1: i32, %arg2: memref<1x8x128xf32, #tpu.memory_space<vmem>>, %arg3: memref<1x8x128xf32, #tpu.memory_space<vmem>>, %arg4: memref<8x128xf32, #tpu.memory_space<vmem>>) attributes {dimension_semantics = [#tpu.dimension_semantics<parallel>, #tpu.dimension_semantics<arbitrary>], iteration_bounds = array<i64: 2, 1>, scalar_prefetch = 0 : i64, scratch_operands = 0 : i64, tpu.core_type = #tpu.core_type<tc>, window_params = [{transform_indices = @transform_0, window_bounds = array<i64: 1, 8, 128>}, {transform_indices = @transform_1, window_bounds = array<i64: 1, 8, 128>}, {transform_indices = @transform_2, window_bounds = array<i64: 8, 128>}]} {
    %c0_i32 = arith.constant 0 : i32
    %0 = arith.cmpi eq, %arg1, %c0_i32 : i32
    %1 = arith.extui %0 : i1 to i32
    %c0_i32_0 = arith.constant 0 : i32
    %2 = arith.cmpi ne, %1, %c0_i32_0 : i32
    scf.if %2 {
      %cst_10 = arith.constant 0.000000e+00 : f32
      %14 = vector.broadcast %cst_10 : f32 to vector<8x128xf32>
      %c0_11 = arith.constant 0 : index
      %c0_12 = arith.constant 0 : index
      %15 = vector.load %arg4[%c0_11, %c0_12] : memref<8x128xf32, #tpu.memory_space<vmem>>, vector<8x128xf32>
      tpu.vector_store %arg4[%c0_11, %c0_12], %14 {strides = array<i32>} : memref<8x128xf32, #tpu.memory_space<vmem>>, vector<8x128xf32>,
    } else {
    }
    %c0 = arith.constant 0 : index
    %c0_1 = arith.constant 0 : index
    %c0_2 = arith.constant 0 : index
    %3 = vector.load %arg2[%c0, %c0_1, %c0_2] : memref<1x8x128xf32, #tpu.memory_space<vmem>>, vector<1x8x128xf32>
    %4 = vector.shape_cast %3 : vector<1x8x128xf32> to vector<8x128xf32>
    %c0_3 = arith.constant 0 : index
    %c0_4 = arith.constant 0 : index
    %c0_5 = arith.constant 0 : index
    %5 = vector.load %arg3[%c0_3, %c0_4, %c0_5] : memref<1x8x128xf32, #tpu.memory_space<vmem>>, vector<1x8x128xf32>
    %6 = vector.shape_cast %5 : vector<1x8x128xf32> to vector<8x128xf32>
    %7 = arith.subf %4, %6 : vector<8x128xf32>
    %8 = arith.mulf %7, %7 : vector<8x128xf32>
    %c0_6 = arith.constant 0 : index
    %c0_7 = arith.constant 0 : index
    %9 = vector.load %arg4[%c0_6, %c0_7] : memref<8x128xf32, #tpu.memory_space<vmem>>, vector<8x128xf32>
    %10 = vector.shape_cast %8 : vector<8x128xf32> to vector<1x8x128xf32>
    %cst = arith.constant dense<0.000000e+00> : vector<8x128xf32>
    %11 = vector.multi_reduction <add>, %10, %cst [0] : vector<1x8x128xf32> to vector<8x128xf32>
    %12 = arith.addf %9, %11 : vector<8x128xf32>
    %c0_8 = arith.constant 0 : index
    %c0_9 = arith.constant 0 : index
    %13 = vector.load %arg4[%c0_8, %c0_9] : memref<8x128xf32, #tpu.memory_space<vmem>>, vector<8x128xf32>
    tpu.vector_store %arg4[%c0_8, %c0_9], %12 {strides = array<i32>} : memref<8x128xf32, #tpu.memory_space<vmem>>, vector<8x128xf32>,
    return
  }
  func.func @transform_0(%arg0: i32, %arg1: i32) -> (i32, i32, i32) {
    %c0_i32 = arith.constant 0 : i32
    %c0_i32_0 = arith.constant 0 : i32
    return %arg0, %arg1, %c0_i32 : i32, i32, i32
  }
  func.func @transform_1(%arg0: i32, %arg1: i32) -> (i32, i32, i32) {
    %c0_i32 = arith.constant 0 : i32
    %c0_i32_0 = arith.constant 0 : i32
    return %arg0, %arg1, %c0_i32 : i32, i32, i32
  }
  func.func @transform_2(%arg0: i32, %arg1: i32) -> (i32, i32) {
    %c0_i32 = arith.constant 0 : i32
    %c0_i32_0 = arith.constant 0 : i32
    return %arg0, %c0_i32 : i32, i32
  }
}

</mosaic_0001>

<bundles_post_ra>
// kernel: mse_loss.1
= control target key start
LH: loop header
LB: loop body
LE: loop exit
PB: predicated region body
PF: predicated region fallthrough
CT: control target
= control target key end

     0   :  { %s356_s9 = smov 0   ;;  %s358_s10 = smov 0   ;;  %s380_s0 = inlined_call_operand.vmem [shape: f32[2,8,128], index: 0, kind: input, shape index: {}]   ;;  %s381_s1 = inlined_call_operand.vmem [shape: f32[2,8,128], index: 1, kind: input, shape index: {}]   ;;  %s382_s2 = inlined_call_operand.vmem [shape: f32[16,128], index: 2, kind: output, shape index: {}]  }
   0x1   :  { %s360_s11 = smov 0  }
   0x2 LB: > { %s24_s12 = sadd.s32 1, %s335_s10  ;;  %p286_p0 = scmp.ge.s32.totalorder %s339_s11, 1  ;;  %s339_s11 = sphi %s360_s11, %s12_s11   ;;  %s335_s10 = sphi %s358_s10, %s384_s10   ;;  %s331_s9 = sphi %s356_s9, %s383_s9  }
   0x3   : > { %p26_p1 = scmp.ge.s32.totalorder %s24_s12, 2  ;;  %p142_p2 = scmp.lt.s32.totalorder %s339_s11, 3 }
   0x5   : > { %s386_s12 = smov (%p26_p1, %s24_s12), 0  ;;  %p143_p3 = pnand %p286_p0, %p142_p2 }
   0x6   : > { %p172_p4 = scmp.lt.s32.totalorder (!%p143_p3), %s331_s9, 1 }
   0x7   : > { %146 = sbr.rel (%p143_p3) target bundleno = 22 (0x16), region = 28 }
   0xc   : > { %s388_s9 = smov (!%p172_p4, %s331_s9), 1 }
   0xd   : > { %s287_s13 = sshll.u32 %s388_s9, 3 }
   0xe   : > { %s178_s16 = scalar_lea.vmem %s380_s0, %s287_s13  ;;  %s185_s19 = scalar_lea.vmem %s381_s1, %s287_s13 }
   0xf   : > { %v195_v0 = vld [vmem:[%s178_s16] sm:$0xff]  ;;  %s189_s22 = scalar_lea.vmem %s382_s2, %s287_s13 }
  0x10   : > { %v196_v1 = vld [vmem:[%s185_s19] sm:$0xff] }
  0x11   : > { %v197_v2 = vsub.f32 %v195_v0, %v196_v1 }
  0x13   : > { %v198_v3 = vmul.f32 %v197_v2, %v197_v2 }
  0x15   : > { %202 = vst [vmem:[%s189_s22] sm:$0xff] %v198_v3 }
  0x16 PF: > { %s12_s11 = sadd.s32 1, %s339_s11   ;;  %s383_s9 = smov %s335_s10 }
  0x17   : > { %p9_p5 = scmp.ge.s32.totalorder %s12_s11, 4   ;;  %s384_s10 = smov %s386_s12 }
  0x19   :  { %11 = sbr.rel (!%p9_p5) target bundleno = 2 (0x2), region = 65 }

</bundles_post_ra>
